<compile_context>
chip_gen: v7x
topology: tpu7x:2x2x1
jax: 0.10.0
libtpu: 0.0.40
codegen_flags: <defaults>
</compile_context>

<pallas_src>
import math
from functools import partial
from types import SimpleNamespace

import jax
import jax.numpy as jnp
from jax.experimental import pallas as pl
from jax.experimental.pallas import tpu as pltpu


_LANES = 128
_LOG_EPS = math.log(1e-4)
_LOG_1M_EPS = math.log(1.0 - 1e-4)


def _round_up(x, m):
    return ((x + m - 1) // m) * m


# ----------------------------------------------------------------------------
# Focal loss (CenterNet _neg_loss with the _sigmoid clamp folded in)
# ----------------------------------------------------------------------------
def _focal_kernel(x_ref, gt_ref, pos_ref, neg_ref, npos_ref):
    x = x_ref[...].astype(jnp.float32)                       # (TR, 128)
    gt = gt_ref[...].astype(jnp.float32)

    # Stable, EUP-lean sigmoid / log-sigmoid:
    #   softplus(-x) = max(-x, 0) + log(1 + exp(-|x|))
    #   log(sigmoid(x)) = -softplus(-x);  log(1 - sigmoid(x)) = -x - softplus(-x)
    ea = jnp.exp(-jnp.abs(x))                                # EUP 1
    sp = jnp.maximum(-x, 0.0) + jnp.log(1.0 + ea)            # EUP 2
    log_p = jnp.clip(-sp, _LOG_EPS, _LOG_1M_EPS)             # log(clip(p, 1e-4, 1-1e-4))
    log_1mp = jnp.clip(-x - sp, _LOG_EPS, _LOG_1M_EPS)
    p = jnp.where(x >= 0.0, 1.0, ea) * pl.reciprocal(1.0 + ea, approx=True)  # EUP 3
    p = jnp.clip(p, 1e-4, 1.0 - 1e-4)

    pos_inds = (gt == 1.0).astype(jnp.float32)
    neg_inds = (gt < 1.0).astype(jnp.float32)
    neg_w = (1.0 - gt) ** 4
    pos_loss = log_p * (1.0 - p) ** 2 * pos_inds
    neg_loss = log_1mp * (p * p) * neg_w * neg_inds

    # Per-lane partials (sublane reduction only); final sum is done outside.
    pos_ref[...] = jnp.sum(pos_loss, axis=0, keepdims=True).reshape(1, 1, _LANES)
    neg_ref[...] = jnp.sum(neg_loss, axis=0, keepdims=True).reshape(1, 1, _LANES)
    npos_ref[...] = jnp.sum(pos_inds, axis=0, keepdims=True).reshape(1, 1, _LANES)


def focal_loss(hm_logits, gt, *, tile_rows=512):
    total = hm_logits.size
    rows = pl.cdiv(total, _LANES)
    tr = min(tile_rows, _round_up(rows, 8))
    rows_pad = _round_up(rows, tr)
    pad = rows_pad * _LANES - total

    x = hm_logits.reshape(-1)
    g = gt.reshape(-1)
    if pad:
        x = jnp.pad(x, (0, pad))                             # logits pad -> 0
        g = jnp.pad(g, (0, pad), constant_values=2.0)        # gt=2: neither pos nor neg
    x = x.reshape(rows_pad, _LANES)
    g = g.reshape(rows_pad, _LANES)

    grid = rows_pad // tr
    part = jax.ShapeDtypeStruct((grid, 1, _LANES), jnp.float32)
    pos_p, neg_p, npos_p = pl.pallas_call(
        _focal_kernel,
        grid=(grid,),
        in_specs=[pl.BlockSpec((tr, _LANES), lambda i: (i, 0))] * 2,
        out_specs=(pl.BlockSpec((1, 1, _LANES), lambda i: (i, 0, 0)),) * 3,
        out_shape=(part,) * 3,
        compiler_params=pltpu.CompilerParams(
            dimension_semantics=("parallel",),
            vmem_limit_bytes=32 * 1024 * 1024),
    )(x, g)

    pos_s = jnp.sum(pos_p)
    neg_s = jnp.sum(neg_p)
    npos = jnp.sum(npos_p)
    return jnp.where(npos == 0.0, -neg_s, -(pos_s + neg_s) / jnp.maximum(npos, 1.0))


# ----------------------------------------------------------------------------
# Fused RegL1Loss for the regression heads that share ind / reg_mask
# ----------------------------------------------------------------------------
def _gather_centers(feat_nchw, ind):
    """Gather the K center columns directly from the (B, C, H*W) layout.

    Avoids a full NCHW->NHWC transpose of the feature map: only B*K*C elements move.
    """
    B, C, H, W = feat_nchw.shape
    K = ind.shape[1]
    f2 = feat_nchw.reshape(B, C, H * W)
    idx = jnp.broadcast_to(ind[:, None, :].astype(jnp.int32), (B, C, K))
    return jnp.take_along_axis(f2, idx, axis=2)              # (B, C, K)


def _reg_l1_kernel(*refs, n_heads):
    pred_tgt = refs[:2 * n_heads]
    mask_ref = refs[2 * n_heads]
    out_refs = refs[2 * n_heads + 1:]
    m = mask_ref[...].astype(jnp.float32)                    # (B, K)
    mb = m[:, None, :]                                       # (B, 1, K) broadcast over C
    for h in range(n_heads):
        p = pred_tgt[2 * h][...].astype(jnp.float32)         # (B, C, K)
        t = pred_tgt[2 * h + 1][...].astype(jnp.float32)     # (B, C, K)
        out_refs[h][0, 0] = jnp.sum(jnp.abs(p * mb - t * mb))
    out_refs[n_heads][0, 0] = jnp.sum(m)


def reg_l1_losses(preds_nchw, targets_bkc, reg_mask, ind):
    """Fused RegL1Loss over several heads. Returns one scalar loss per head."""
    n_heads = len(preds_nchw)
    ops = []
    chans = []
    for pred, tgt in zip(preds_nchw, targets_bkc):
        chans.append(pred.shape[1])
        ops.append(_gather_centers(pred, ind))               # (B, C, K) gathered pred
        ops.append(jnp.transpose(tgt, (0, 2, 1)))            # (B, C, K) target
    outs = pl.pallas_call(
        partial(_reg_l1_kernel, n_heads=n_heads),
        out_shape=(jax.ShapeDtypeStruct((1, 1), jnp.float32),) * (n_heads + 1),
        in_specs=[pl.BlockSpec(memory_space=pltpu.MemorySpace.VMEM)] * (2 * n_heads + 1),
        out_specs=(pl.BlockSpec(memory_space=pltpu.MemorySpace.SMEM),) * (n_heads + 1),
    )(*ops, reg_mask)
    mask_sum = outs[n_heads][0, 0]
    return [outs[h][0, 0] / (mask_sum * chans[h] + 1e-4) for h in range(n_heads)]


# ----------------------------------------------------------------------------
# ID loss: normalize + emb_scale + classifier matmul (bf16 MXU) + cross-entropy
# with ignore_index=-1, streamed logsumexp over class tiles.
# ----------------------------------------------------------------------------
def _id_ce_kernel(x_ref, w_ref, b_ref, tgt_ref, out_ref,
                  xn_scr, m_scr, s_scr, pick_scr, *, emb_scale, tc):
    ci = pl.program_id(1)

    @pl.when(ci == 0)
    def _():
        x = x_ref[...].astype(jnp.float32)                   # (TN, D)
        ss = jnp.sum(x * x, axis=1, keepdims=True)
        inv = jax.lax.rsqrt(jnp.maximum(ss, 1e-24))          # == 1 / max(||x||, 1e-12)
        xn_scr[...] = (emb_scale * x * inv).astype(xn_scr.dtype)
        m_scr[...] = jnp.full_like(m_scr, -1e30)
        s_scr[...] = jnp.zeros_like(s_scr)
        pick_scr[...] = jnp.zeros_like(pick_scr)

    logits = jnp.dot(xn_scr[...], w_ref[...],
                     preferred_element_type=jnp.float32) + b_ref[...]   # (TN, TC)
    tgt = tgt_ref[...]                                       # (TN, 1) int32, -1 == ignore
    col = jax.lax.broadcasted_iota(jnp.int32, logits.shape, 1) + ci * tc
    onehot = (col == tgt).astype(jnp.float32)
    pick_scr[...] += jnp.sum(logits * onehot, axis=1, keepdims=True)

    m_new = jnp.maximum(m_scr[...], jnp.max(logits, axis=1, keepdims=True))
    s_scr[...] = (s_scr[...] * jnp.exp(m_scr[...] - m_new)
                  + jnp.sum(jnp.exp(logits - m_new), axis=1, keepdims=True))
    m_scr[...] = m_new

    @pl.when(ci == pl.num_programs(1) - 1)
    def _():
        lse = m_scr[...] + jnp.log(s_scr[...])
        valid = (tgt >= 0).astype(jnp.float32)
        lsum = jnp.sum((lse - pick_scr[...]) * valid)
        cnt = jnp.sum(valid)
        lane = jax.lax.broadcasted_iota(jnp.int32, (1, 1, _LANES), 2)
        out_ref[...] = jnp.where(lane == 0, lsum, jnp.where(lane == 1, cnt, 0.0))


def id_ce_loss(id_feat_nchw, ind, reg_mask, ids, cls_w, cls_b, emb_scale):
    B, D, H, W = id_feat_nchw.shape
    K = ind.shape[1]
    nID = cls_w.shape[1]
    N = B * K

    # Gather the K center embeddings straight from (B, D, H*W); only the small
    # (B, D, K) slab is transposed / reshaped before the kernel.
    g = _gather_centers(id_feat_nchw, ind)                   # (B, D, K)
    x = jnp.transpose(g, (0, 2, 1)).reshape(N, D)

    tgt = jnp.where(reg_mask.reshape(-1) > 0,
                    ids.reshape(-1).astype(jnp.int32), jnp.int32(-1))

    # Row (N) tiling -> "parallel"; class (nID) tiling -> streamed "arbitrary".
    tn = _LANES if N > _LANES else _round_up(N, 8)
    n_pad = _round_up(N, tn)
    tc = _LANES * min(max(pl.cdiv(nID, _LANES), 1), 8)
    c_pad = _round_up(nID, tc)

    if n_pad != N:
        x = jnp.pad(x, ((0, n_pad - N), (0, 0)))
        tgt = jnp.pad(tgt, (0, n_pad - N), constant_values=-1)
    tgt = tgt.reshape(n_pad, 1)

    w = cls_w.astype(jnp.bfloat16)                           # bf16 MXU feed, f32 accumulate
    b = cls_b.astype(jnp.float32)
    if c_pad != nID:
        w = jnp.pad(w, ((0, 0), (0, c_pad - nID)))
        b = jnp.pad(b, (0, c_pad - nID), constant_values=-1e9)  # padded classes never win
    b = b.reshape(1, c_pad)

    nb, cb = n_pad // tn, c_pad // tc
    out = pl.pallas_call(
        partial(_id_ce_kernel, emb_scale=float(emb_scale), tc=tc),
        grid=(nb, cb),
        in_specs=[
            pl.BlockSpec((tn, D), lambda ni, ci: (ni, 0)),   # embeddings (row-resident)
            pl.BlockSpec((D, tc), lambda ni, ci: (0, ci)),   # classifier weight tile
            pl.BlockSpec((1, tc), lambda ni, ci: (0, ci)),   # classifier bias tile
            pl.BlockSpec((tn, 1), lambda ni, ci: (ni, 0)),   # targets
        ],
        out_specs=pl.BlockSpec((1, 1, _LANES), lambda ni, ci: (ni, 0, 0)),
        out_shape=jax.ShapeDtypeStruct((nb, 1, _LANES), jnp.float32),
        scratch_shapes=[
            pltpu.VMEM((tn, D), jnp.bfloat16),               # normalized/scaled embeddings
            pltpu.VMEM((tn, 1), jnp.float32),                # running max
            pltpu.VMEM((tn, 1), jnp.float32),                # running sum-exp
            pltpu.VMEM((tn, 1), jnp.float32),                # picked (target) logit
        ],
        compiler_params=pltpu.CompilerParams(
            dimension_semantics=("parallel", "arbitrary"),
            vmem_limit_bytes=32 * 1024 * 1024),
    )(x, w, b, tgt)

    lsum = jnp.sum(out[:, 0, 0])
    cnt = jnp.sum(out[:, 0, 1])
    return jnp.where(cnt > 0, lsum / jnp.maximum(cnt, 1.0), jnp.float32(0.0))


# ----------------------------------------------------------------------------
# Forward pass (mirrors MotLoss.forward)
# ----------------------------------------------------------------------------
def mot_loss_forward(outputs, batch, params, opt):
    emb_scale = math.sqrt(2) * math.log(opt.nID - 1)
    hm_loss = jnp.float32(0.0)
    wh_loss = jnp.float32(0.0)
    off_loss = jnp.float32(0.0)
    id_loss = jnp.float32(0.0)

    for s in range(opt.num_stacks):
        output = outputs[s]
        # TODO(synk): opt.mse_loss (MSELoss heatmap criterion) is not implemented.
        hm_loss = hm_loss + focal_loss(output['hm'], batch['hm']) / opt.num_stacks

        # TODO(synk): dense_wh / norm_wh / cat_spec_wh alternative wh criteria not implemented.
        heads, targets, names = [], [], []
        if opt.wh_weight > 0:
            heads.append(output['wh']); targets.append(batch['wh']); names.append('wh')
        if opt.reg_offset and opt.off_weight > 0:
            heads.append(output['reg']); targets.append(batch['reg']); names.append('off')
        if heads:
            losses = reg_l1_losses(heads, targets, batch['reg_mask'], batch['ind'])
            for name, l in zip(names, losses):
                if name == 'wh':
                    wh_loss = wh_loss + l / opt.num_stacks
                else:
                    off_loss = off_loss + l / opt.num_stacks

        if opt.id_weight > 0:
            id_loss = id_loss + id_ce_loss(
                output['id'], batch['ind'], batch['reg_mask'], batch['ids'],
                params['cls_w'], params['cls_b'], emb_scale)

    det_loss = opt.hm_weight * hm_loss + opt.wh_weight * wh_loss + opt.off_weight * off_loss
    s_det = params['s_det']
    s_id = params['s_id']
    loss = jnp.exp(-s_det) * det_loss + jnp.exp(-s_id) * id_loss + (s_det + s_id)
    loss = loss * 0.5
    loss_stats = {
        'loss': loss.mean(), 'hm_loss': hm_loss.mean(), 'wh_loss': wh_loss.mean(),
        'off_loss': off_loss.mean(), 'id_loss': id_loss.mean(),
    }
    return loss, loss_stats


# ----------------------------------------------------------------------------
if __name__ == "__main__":
    B, C_hm, H, W = 2, 4, 16, 16
    K = 8
    emb_dim = 32
    nID = 64

    opt = SimpleNamespace(
        num_stacks=1, mse_loss=False, reg_loss='l1',
        dense_wh=False, norm_wh=False, cat_spec_wh=False, reg_offset=True,
        hm_weight=1.0, wh_weight=0.1, off_weight=1.0, id_weight=1.0,
        reid_dim=emb_dim, nID=nID,
    )

    key = jax.random.PRNGKey(0)
    ks = jax.random.split(key, 16)

    # predictions (NCHW, like PyTorch conv heads)
    hm_logits = jax.random.normal(ks[0], (B, C_hm, H, W), jnp.float32)
    wh_pred = jax.random.normal(ks[1], (B, 2, H, W), jnp.float32)
    reg_pred = jax.random.normal(ks[2], (B, 2, H, W), jnp.float32) * 0.1
    id_feat = jax.random.normal(ks[3], (B, emb_dim, H, W), jnp.float32)

    # ground-truth batch
    gt_hm = jnp.clip(jax.random.uniform(ks[6], (B, C_hm, H, W)), 0.0, 0.999)
    gt_hm = gt_hm.at[:, :, 4, 5].set(1.0).at[:, :, 10, 12].set(1.0)      # exact peaks
    ind = jax.random.randint(ks[7], (B, K), 0, H * W, dtype=jnp.int32)
    reg_mask = (jnp.arange(K)[None, :] < jnp.array([[5], [3]])).astype(jnp.float32)  # (B, K)
    wh_target = jax.random.uniform(ks[8], (B, K, 2), jnp.float32, 0.5, 4.0)
    reg_target = jax.random.uniform(ks[9], (B, K, 2), jnp.float32, 0.0, 1.0)
    ids = jax.random.randint(ks[10], (B, K), 0, nID, dtype=jnp.int32)
    ids = ids.at[0, 2].set(-1)                                            # some ignored ids

    # deterministic parameter init (nn.Linear-like uniform bounds)
    bound = 1.0 / math.sqrt(emb_dim)
    cls_w = jax.random.uniform(ks[11], (emb_dim, nID), jnp.float32, -bound, bound)
    cls_b = jax.random.uniform(ks[12], (nID,), jnp.float32, -bound, bound)
    params = {
        'cls_w': cls_w,
        'cls_b': cls_b,
        's_det': jnp.full((1,), -1.85, jnp.float32),
        's_id': jnp.full((1,), -1.05, jnp.float32),
    }

    outputs = [{'hm': hm_logits, 'wh': wh_pred, 'reg': reg_pred, 'id': id_feat}]
    batch = {
        'hm': gt_hm, 'reg_mask': reg_mask, 'ind': ind,
        'wh': wh_target, 'reg': reg_target, 'ids': ids,
    }

    loss, loss_stats = mot_loss_forward(outputs, batch, params, opt)
    jax.block_until_ready(loss)
    jax.block_until_ready(loss_stats['loss'])
    print("KERNEL_OK")
</pallas_src>

<mosaic_0001>
module attributes {stable_mosaic.version = 11 : i64} {
  func.func @_focal_kernel(%arg0: i32, %arg1: memref<16x128xf32, #tpu.memory_space<vmem>>, %arg2: memref<16x128xf32, #tpu.memory_space<vmem>>, %arg3: memref<1x1x128xf32, #tpu.memory_space<vmem>>, %arg4: memref<1x1x128xf32, #tpu.memory_space<vmem>>, %arg5: memref<1x1x128xf32, #tpu.memory_space<vmem>>) attributes {dimension_semantics = [#tpu.dimension_semantics<parallel>], iteration_bounds = array<i64: 1>, scalar_prefetch = 0 : i64, scratch_operands = 0 : i64, tpu.core_type = #tpu.core_type<tc>, window_params = [{transform_indices = @transform_0, window_bounds = array<i64: 16, 128>}, {transform_indices = @transform_1, window_bounds = array<i64: 16, 128>}, {transform_indices = @transform_2, window_bounds = array<i64: 1, 1, 128>}, {transform_indices = @transform_3, window_bounds = array<i64: 1, 1, 128>}, {transform_indices = @transform_4, window_bounds = array<i64: 1, 1, 128>}]} {
    %c0 = arith.constant 0 : index
    %c0_0 = arith.constant 0 : index
    %0 = vector.load %arg1[%c0, %c0_0] : memref<16x128xf32, #tpu.memory_space<vmem>>, vector<16x128xf32>
    %c0_1 = arith.constant 0 : index
    %c0_2 = arith.constant 0 : index
    %1 = vector.load %arg2[%c0_1, %c0_2] : memref<16x128xf32, #tpu.memory_space<vmem>>, vector<16x128xf32>
    %2 = math.absf %0 : vector<16x128xf32>
    %cst = arith.constant 0.000000e+00 : f32
    %3 = vector.broadcast %cst : f32 to vector<16x128xf32>
    %4 = arith.subf %3, %2 : vector<16x128xf32>
    %5 = math.exp %4 : vector<16x128xf32>
    %cst_3 = arith.constant 0.000000e+00 : f32
    %6 = vector.broadcast %cst_3 : f32 to vector<16x128xf32>
    %7 = arith.subf %6, %0 : vector<16x128xf32>
    %cst_4 = arith.constant 0.000000e+00 : f32
    %8 = vector.broadcast %cst_4 : f32 to vector<16x128xf32>
    %9 = arith.maximumf %7, %8 : vector<16x128xf32>
    %cst_5 = arith.constant 1.000000e+00 : f32
    %10 = vector.broadcast %cst_5 : f32 to vector<16x128xf32>
    %11 = arith.addf %10, %5 : vector<16x128xf32>
    %12 = math.log %11 : vector<16x128xf32>
    %13 = arith.addf %9, %12 : vector<16x128xf32>
    %cst_6 = arith.constant 0.000000e+00 : f32
    %14 = vector.broadcast %cst_6 : f32 to vector<16x128xf32>
    %15 = arith.subf %14, %13 : vector<16x128xf32>
    %cst_7 = arith.constant -9.21034049 : f32
    %cst_8 = arith.constant -1.000050e-04 : f32
    %16 = vector.broadcast %cst_7 : f32 to vector<16x128xf32>
    %17 = arith.maximumf %16, %15 : vector<16x128xf32>
    %18 = vector.broadcast %cst_8 : f32 to vector<16x128xf32>
    %19 = arith.minimumf %18, %17 : vector<16x128xf32>
    %cst_9 = arith.constant 0.000000e+00 : f32
    %20 = vector.broadcast %cst_9 : f32 to vector<16x128xf32>
    %21 = arith.subf %20, %0 : vector<16x128xf32>
    %22 = arith.subf %21, %13 : vector<16x128xf32>
    %cst_10 = arith.constant -9.21034049 : f32
    %cst_11 = arith.constant -1.000050e-04 : f32
    %23 = vector.broadcast %cst_10 : f32 to vector<16x128xf32>
    %24 = arith.maximumf %23, %22 : vector<16x128xf32>
    %25 = vector.broadcast %cst_11 : f32 to vector<16x128xf32>
    %26 = arith.minimumf %25, %24 : vector<16x128xf32>
    %cst_12 = arith.constant 0.000000e+00 : f32
    %27 = vector.broadcast %cst_12 : f32 to vector<16x128xf32>
    %28 = arith.cmpf oge, %0, %27 : vector<16x128xf32>
    %cst_13 = arith.constant 1.000000e+00 : f32
    %29 = vector.broadcast %cst_13 : f32 to vector<16x128xf32>
    %30 = arith.select %28, %29, %5 : vector<16x128xi1>, vector<16x128xf32>
    %cst_14 = arith.constant 1.000000e+00 : f32
    %31 = vector.broadcast %cst_14 : f32 to vector<16x128xf32>
    %32 = arith.addf %31, %5 : vector<16x128xf32>
    %33 = tpu.reciprocal %32 {approx = true} : vector<16x128xf32> -> vector<16x128xf32>
    %34 = arith.mulf %30, %33 : vector<16x128xf32>
    %cst_15 = arith.constant 9.99999974E-5 : f32
    %cst_16 = arith.constant 0.999899983 : f32
    %35 = vector.broadcast %cst_15 : f32 to vector<16x128xf32>
    %36 = arith.maximumf %35, %34 : vector<16x128xf32>
    %37 = vector.broadcast %cst_16 : f32 to vector<16x128xf32>
    %38 = arith.minimumf %37, %36 : vector<16x128xf32>
    %cst_17 = arith.constant 1.000000e+00 : f32
    %39 = vector.broadcast %cst_17 : f32 to vector<16x128xf32>
    %40 = arith.cmpf oeq, %1, %39 : vector<16x128xf32>
    %41 = arith.extui %40 : vector<16x128xi1> to vector<16x128xi32>
    %42 = arith.sitofp %41 : vector<16x128xi32> to vector<16x128xf32>
    %cst_18 = arith.constant 1.000000e+00 : f32
    %43 = vector.broadcast %cst_18 : f32 to vector<16x128xf32>
    %44 = arith.cmpf olt, %1, %43 : vector<16x128xf32>
    %45 = arith.extui %44 : vector<16x128xi1> to vector<16x128xi32>
    %46 = arith.sitofp %45 : vector<16x128xi32> to vector<16x128xf32>
    %cst_19 = arith.constant 1.000000e+00 : f32
    %47 = vector.broadcast %cst_19 : f32 to vector<16x128xf32>
    %48 = arith.subf %47, %1 : vector<16x128xf32>
    %49 = arith.mulf %48, %48 : vector<16x128xf32>
    %50 = arith.mulf %49, %49 : vector<16x128xf32>
    %cst_20 = arith.constant 1.000000e+00 : f32
    %51 = vector.broadcast %cst_20 : f32 to vector<16x128xf32>
    %52 = arith.subf %51, %38 : vector<16x128xf32>
    %53 = arith.mulf %52, %52 : vector<16x128xf32>
    %54 = arith.mulf %19, %53 : vector<16x128xf32>
    %55 = arith.mulf %54, %42 : vector<16x128xf32>
    %56 = arith.mulf %38, %38 : vector<16x128xf32>
    %57 = arith.mulf %26, %56 : vector<16x128xf32>
    %58 = arith.mulf %57, %50 : vector<16x128xf32>
    %59 = arith.mulf %58, %46 : vector<16x128xf32>
    %cst_21 = arith.constant dense<0.000000e+00> : vector<128xf32>
    %60 = vector.multi_reduction <add>, %55, %cst_21 [0] : vector<16x128xf32> to vector<128xf32>
    %61 = vector.shape_cast %60 : vector<128xf32> to vector<1x128xf32>
    %62 = vector.shape_cast %61 : vector<1x128xf32> to vector<1x1x128xf32>
    %c0_22 = arith.constant 0 : index
    %c0_23 = arith.constant 0 : index
    %c0_24 = arith.constant 0 : index
    %63 = vector.load %arg3[%c0_22, %c0_23, %c0_24] : memref<1x1x128xf32, #tpu.memory_space<vmem>>, vector<1x1x128xf32>
    tpu.vector_store %arg3[%c0_22, %c0_23, %c0_24], %62 {strides = array<i32>} : memref<1x1x128xf32, #tpu.memory_space<vmem>>, vector<1x1x128xf32>,
    %cst_25 = arith.constant dense<0.000000e+00> : vector<128xf32>
    %64 = vector.multi_reduction <add>, %59, %cst_25 [0] : vector<16x128xf32> to vector<128xf32>
    %65 = vector.shape_cast %64 : vector<128xf32> to vector<1x128xf32>
    %66 = vector.shape_cast %65 : vector<1x128xf32> to vector<1x1x128xf32>
    %c0_26 = arith.constant 0 : index
    %c0_27 = arith.constant 0 : index
    %c0_28 = arith.constant 0 : index
    %67 = vector.load %arg4[%c0_26, %c0_27, %c0_28] : memref<1x1x128xf32, #tpu.memory_space<vmem>>, vector<1x1x128xf32>
    tpu.vector_store %arg4[%c0_26, %c0_27, %c0_28], %66 {strides = array<i32>} : memref<1x1x128xf32, #tpu.memory_space<vmem>>, vector<1x1x128xf32>,
    %cst_29 = arith.constant dense<0.000000e+00> : vector<128xf32>
    %68 = vector.multi_reduction <add>, %42, %cst_29 [0] : vector<16x128xf32> to vector<128xf32>
    %69 = vector.shape_cast %68 : vector<128xf32> to vector<1x128xf32>
    %70 = vector.shape_cast %69 : vector<1x128xf32> to vector<1x1x128xf32>
    %c0_30 = arith.constant 0 : index
    %c0_31 = arith.constant 0 : index
    %c0_32 = arith.constant 0 : index
    %71 = vector.load %arg5[%c0_30, %c0_31, %c0_32] : memref<1x1x128xf32, #tpu.memory_space<vmem>>, vector<1x1x128xf32>
    tpu.vector_store %arg5[%c0_30, %c0_31, %c0_32], %70 {strides = array<i32>} : memref<1x1x128xf32, #tpu.memory_space<vmem>>, vector<1x1x128xf32>,
    return
  }
  func.func @transform_0(%arg0: i32) -> (i32, i32) {
    %c0_i32 = arith.constant 0 : i32
    %c0_i32_0 = arith.constant 0 : i32
    return %arg0, %c0_i32 : i32, i32
  }
  func.func @transform_1(%arg0: i32) -> (i32, i32) {
    %c0_i32 = arith.constant 0 : i32
    %c0_i32_0 = arith.constant 0 : i32
    return %arg0, %c0_i32 : i32, i32
  }
  func.func @transform_2(%arg0: i32) -> (i32, i32, i32) {
    %c0_i32 = arith.constant 0 : i32
    %c0_i32_0 = arith.constant 0 : i32
    %c0_i32_1 = arith.constant 0 : i32
    return %arg0, %c0_i32, %c0_i32_0 : i32, i32, i32
  }
  func.func @transform_3(%arg0: i32) -> (i32, i32, i32) {
    %c0_i32 = arith.constant 0 : i32
    %c0_i32_0 = arith.constant 0 : i32
    %c0_i32_1 = arith.constant 0 : i32
    return %arg0, %c0_i32, %c0_i32_0 : i32, i32, i32
  }
  func.func @transform_4(%arg0: i32) -> (i32, i32, i32) {
    %c0_i32 = arith.constant 0 : i32
    %c0_i32_0 = arith.constant 0 : i32
    %c0_i32_1 = arith.constant 0 : i32
    return %arg0, %c0_i32, %c0_i32_0 : i32, i32, i32
  }
}

</mosaic_0001>

<bundles_post_ra>
// kernel: tpu_custom_call.1
= control target key start
LH: loop header
LB: loop body
LE: loop exit
PB: predicated region body
PF: predicated region fallthrough
CT: control target
= control target key end

     0   :  { %10 = vsyncpa [#allocation3], 0  ;;  %s470_s0 = inlined_call_operand.hbm [shape: f32[16,128], index: 0, kind: input, shape index: {}]   ;;  %s471_s1 = inlined_call_operand.hbm [shape: f32[16,128], index: 1, kind: input, shape index: {}]   ;;  %s472_s2 = inlined_call_operand.hbm [shape: f32[1,1,128], index: 2, kind: output, shape index: {0}]   ;;  %s473_s3 = inlined_call_operand.hbm [shape: f32[1,1,128], index: 3, kind: output, shape index: {1}]   ;;  %s474_s4 = inlined_call_operand.hbm [shape: f32[1,1,128], index: 4, kind: output, shape index: {2}]  }
   0x1   :  { %11 = vsyncpa [#allocation6], 0 }
   0x2   :  { %12 = vsyncpa [#allocation4], 0 }
   0x3   :  { %13 = vsyncpa [#allocation9], 0  ;;  %s335_s15 = smov [#allocation2]   ;;  %s217_s19 = scalar_lea.hbm %s470_s0, 256 }
   0x4   :  { %s19_s16 = sshll.u32 %s335_s15, 4  ;;  %p218_p0 = scmp.ne.s32.totalorder %s470_s0, %s217_s19  ;;  %s20_s16 = int_to_ptr.vmem [resolvable:$true] %s19_s16 }
   0x5   :  { %p221_p1 = scmp.lt.u32.totalorder %s217_s19, %s470_s0 }
   0x7   :  { %p223_p2 = pnand %p221_p1, %p218_p0 }
   0x9   :  { %226 = shalt.err (!%p223_p2)
}
   0xa   :  { %s227_s24 = scalar_lea.vmem %s20_s16, 256  ;;  %p232_p4 = scmp.lt.s32.totalorder %s20_s16, %s20_s16 }
   0xb   :  { %p228_p3 = scmp.ne.s32.totalorder %s20_s16, %s227_s24  ;;  %p233_p5 = scmp.lt.s32.totalorder %s227_s24, %s227_s24 }
   0xd   :  { %p234_p6 = por %p233_p5, %p232_p4 }
   0xf   :  { %p235_p7 = pnand %p234_p6, %p228_p3 }
  0x11   :  { %238 = shalt.err (!%p235_p7)
}
  0x12   :  { %s336_s25 = smov 128   ;;  %s337_s26 = smov 8  }
  0x13   :  { %25 = dma.hbm_to_vmem [thread:$0]  %s470_s0, 256, %s20_s16, [#allocation3], %s336_s25, %s336_s25, %s337_s26  }
  0x14   :  { %s338_s29 = smov [#allocation5]   ;;  %s239_s7 = scalar_lea.hbm %s471_s1, 256 }
  0x15   :  { %s31_s30 = sshll.u32 %s338_s29, 4  ;;  %p240_p8 = scmp.ne.s32.totalorder %s471_s1, %s239_s7  ;;  %s32_s30 = int_to_ptr.vmem [resolvable:$true] %s31_s30 }
  0x16   :  { %p243_p9 = scmp.lt.u32.totalorder %s239_s7, %s471_s1 }
  0x18   :  { %p245_p10 = pnand %p243_p9, %p240_p8 }
  0x1a   :  { %248 = shalt.err (!%p245_p10)
}
  0x1b   :  { %s249_s12 = scalar_lea.vmem %s32_s30, 256  ;;  %p254_p12 = scmp.lt.s32.totalorder %s32_s30, %s32_s30 }
  0x1c   :  { %p250_p11 = scmp.ne.s32.totalorder %s32_s30, %s249_s12  ;;  %p255_p13 = scmp.lt.s32.totalorder %s249_s12, %s249_s12 }
  0x1e   :  { %p256_p0 = por %p255_p13, %p254_p12 }
  0x20   :  { %p257_p1 = pnand %p256_p0, %p250_p11 }
  0x22   :  { %260 = shalt.err (!%p257_p1)
}
  0x23   :  { %37 = dma.hbm_to_vmem [thread:$0]  %s471_s1, 256, %s32_s30, [#allocation6], %s336_s25, %s336_s25, %s337_s26  }
  0x24   :  { %327 = dma.done.wait [#allocation3], 256  }
  0x25   :  { %328 = vsyncadd [#allocation3], 4294967040 }
  0x26   :  { %329 = dma.done.wait [#allocation6], 256  }
  0x27   :  { %330 = vsyncadd [#allocation6], 4294967040  ;;  %v44_v0 = vld [vmem:[#allocation2] sm:$0xff]  ;;  %v45_v1 = vld [vmem:[#allocation2 + $0x8] sm:$0xff]  ;;  %v339_v10 = vmov 0.0   ;;  %s340_s1 = smov [#allocation8]  }
  0x28   :  { %v48_v2 = vand.u32 2147483647, %v44_v0  ;;  %v49_v3 = vand.u32 2147483647, %v45_v1  ;;  %v392_v6 = vld [vmem:[#allocation5] sm:$0xff]  ;;  %v394_v7 = vld [vmem:[#allocation5 + $0x8] sm:$0xff] }
  0x29   :  { %vm92_vm0 = vcmp.eq.f32.partialorder %v392_v6, 1.0  ;;  %vm93_vm1 = vcmp.eq.f32.partialorder %v394_v7, 1.0  ;;  %v56_v24 = vsub.f32 0.0, %v44_v0  ;;  %v57_v25 = vsub.f32 0.0, %v45_v1  ;;  %s166_s14 = sshll.u32 %s340_s1, 4  ;;  %s341_s15 = smov [#allocation7]   ;;  %s167_s14 = int_to_ptr.vmem [resolvable:$true] %s166_s14 }
  0x2a   :  { %v50_v4 = vsub.f32 0.0, %v48_v2  ;;  %v51_v5 = vsub.f32 0.0, %v49_v3  ;;  %v399_v11 = vsel %vm92_vm0, 1.0, %v339_v10  ;;  %v402_v12 = vsel %vm93_vm1, 1.0, %v339_v10  ;;  %s156_s16 = sshll.u32 %s341_s15, 4  ;;  %s342_s17 = smov [#allocation10]   ;;  %s418_s16 = int_to_ptr.vmem [resolvable:$true] %s156_s16 }
  0x2b   :  { %v142_v13 = vadd.f32 %v402_v12, %v399_v11  ;;  %vm80_vm2 = vcmp.ge.f32.partialorder %v44_v0, 0.0  ;;  %vm81_vm3 = vcmp.ge.f32.partialorder %v45_v1, 0.0  ;;  %v58_v26 = vmax.f32 %v56_v24, 0.0  ;;  %s176_s18 = sshll.u32 %s342_s17, 4  ;;  %s261_s19 = scalar_lea.vmem %s167_s14, 16  ;;  %s420_s18 = int_to_ptr.vmem [resolvable:$true] %s176_s18 }
  0x2c   :  { %v52_v8 = vmul.f32 1.442695, %v50_v4  ;;  %v54_v9 = vmul.f32 1.442695, %v51_v5  ;;  %v104_v27 = vsub.f32 1.0, %v392_v6  ;;  %v59_v29 = vmax.f32 %v57_v25, 0.0  ;;  %p262_p2 = scmp.ne.s32.totalorder %s167_s14, %s261_s19  ;;  %p266_p3 = scmp.lt.s32.totalorder %s167_s14, %s167_s14 }
  0x2d   :  { %v143_v14 = vrot.slane %v142_v13, 4  ;;  %v105_v31 = vsub.f32 1.0, %v394_v7  ;;  %vm98_vm4 = vcmp.lt.f32.partialorder %v392_v6, 1.0  ;;  %vm99_vm5 = vcmp.lt.f32.partialorder %v394_v7, 1.0  ;;  %s265_s20 = scalar_lea.vmem %s167_s14, 32 }
  0x2e   :  { %205 = vpow2.f32 %v52_v8  ;;  %v106_v40 = vmul.f32 %v104_v27, %v104_v27  ;;  %v195_v4 = vsel %vm98_vm4, 1.0, %v339_v10  ;;  %p267_p4 = scmp.lt.s32.totalorder %s265_s20, %s261_s19 }
  0x2f   :  { %207 = vpow2.f32 %v54_v9  ;;  %v144_v15 = vadd.f32 %v143_v14, %v142_v13  ;;  %v107_v43 = vmul.f32 %v105_v31, %v105_v31  ;;  %v196_v9 = vsel %vm99_vm5, 1.0, %v339_v10 }
  0x30   :  { %v108_v52 = vmul.f32 %v106_v40, %v106_v40  ;;  %p268_p5 = por %p267_p4, %p266_p3 }
  0x31   :  { %v145_v16 = vrot.slane %v144_v15, 2  ;;  %v109_v56 = vmul.f32 %v107_v43, %v107_v43 }
  0x32   :  { %p269_p6 = pnand %p268_p5, %p262_p2 }
  0x33   :  { %v146_v17 = vadd.f32 %v145_v16, %v144_v15 }
  0x35   :  { %v147_v21 = vrot.slane %v146_v17, 1 }
  0x37   :  { %v148_v23 = vadd.f32 %v147_v21, %v146_v17 }
  0x38   :  { %v206_v18 = vpop.eup %205 }
  0x39   :  { %v208_v19 = vpop.eup %207  ;;  %v60_v20 = vadd.f32 1.0, %v206_v18  ;;  %149 = vst [vmem:[#allocation10] sm:$0x1] %v148_v23  ;;  %v82_v30 = vsel %vm80_vm2, 1.0, %v206_v18 }
  0x3a   :  { %v61_v22 = vadd.f32 1.0, %v208_v19  ;;  %v83_v34 = vsel %vm81_vm3, 1.0, %v208_v19 }
  0x3b   :  { %209 = vlog2.f32 %v60_v20 }
  0x3c   :  { %211 = vlog2.f32 %v61_v22 }
  0x3d   :  { %213 = vrcp.f32 %v60_v20 }
  0x3e   :  { %215 = vrcp.f32 %v61_v22 }
  0x45   :  { %v210_v28 = vpop.eup %209 }
  0x46   :  { %v212_v32 = vpop.eup %211  ;;  %v63_v33 = vmul.f32 0.6931472, %v210_v28 }
  0x47   :  { %v214_v35 = vpop.eup %213  ;;  %v65_v36 = vmul.f32 0.6931472, %v212_v32 }
  0x48   :  { %v216_v37 = vpop.eup %215  ;;  %v66_v38 = vadd.f32 %v63_v33, %v58_v26  ;;  %v86_v39 = vmul.f32 %v214_v35, %v82_v30 }
  0x49   :  { %v67_v41 = vadd.f32 %v65_v36, %v59_v29  ;;  %v87_v42 = vmul.f32 %v216_v37, %v83_v34 }
  0x4a   :  { %v74_v44 = vsub.f32 %v56_v24, %v66_v38  ;;  %v88_v45 = vmax.f32 %v86_v39, 0.0001  ;;  %v68_v46 = vsub.f32 0.0, %v66_v38 }
  0x4b   :  { %v75_v47 = vsub.f32 %v57_v25, %v67_v41  ;;  %v89_v48 = vmax.f32 %v87_v42, 0.0001  ;;  %v69_v49 = vsub.f32 0.0, %v67_v41 }
  0x4c   :  { %v76_v50 = vmax.f32 %v74_v44, -9.2103405  ;;  %v90_v51 = vmin.f32 %v88_v45, 0.9999  ;;  %v70_v53 = vmax.f32 %v68_v46, -9.2103405 }
  0x4d   :  { %v77_v54 = vmax.f32 %v75_v47, -9.2103405  ;;  %v91_v55 = vmin.f32 %v89_v48, 0.9999  ;;  %v71_v57 = vmax.f32 %v69_v49, -9.2103405 }
  0x4e   :  { %v78_v58 = vmin.f32 %v76_v50, -0.000100005  ;;  %v118_v59 = vmul.f32 %v90_v51, %v90_v51  ;;  %v72_v60 = vmin.f32 %v70_v53, -0.000100005  ;;  %v110_v61 = vsub.f32 1.0, %v90_v51 }
  0x4f   :  { %v79_v62 = vmin.f32 %v77_v54, -0.000100005  ;;  %v119_v63 = vmul.f32 %v91_v55, %v91_v55  ;;  %v73_v0 = vmin.f32 %v71_v57, -0.000100005  ;;  %v111_v1 = vsub.f32 1.0, %v91_v55 }
  0x50   :  { %v120_v2 = vmul.f32 %v118_v59, %v78_v58  ;;  %v112_v3 = vmul.f32 %v110_v61, %v110_v61 }
  0x51   :  { %v121_v5 = vmul.f32 %v119_v63, %v79_v62  ;;  %v113_v8 = vmul.f32 %v111_v1, %v111_v1 }
  0x52   :  { %v122_v13 = vmul.f32 %v120_v2, %v108_v52  ;;  %v114_v14 = vmul.f32 %v112_v3, %v72_v60 }
  0x53   :  { %v123_v15 = vmul.f32 %v121_v5, %v109_v56  ;;  %v115_v16 = vmul.f32 %v113_v8, %v73_v0 }
  0x54   :  { %v124_v17 = vmul.f32 %v195_v4, %v122_v13  ;;  %v116_v18 = vmul.f32 %v399_v11, %v114_v14 }
  0x55   :  { %v125_v19 = vmul.f32 %v196_v9, %v123_v15  ;;  %v117_v20 = vmul.f32 %v402_v12, %v115_v16 }
  0x57   :  { %v134_v21 = vadd.f32 %v125_v19, %v124_v17  ;;  %v126_v22 = vadd.f32 %v117_v20, %v116_v18 }
  0x59   :  { %v135_v6 = vrot.slane %v134_v21, 4  ;;  %v127_v23 = vrot.slane %v126_v22, 4 }
  0x5b   :  { %v136_v24 = vadd.f32 %v135_v6, %v134_v21  ;;  %v128_v25 = vadd.f32 %v127_v23, %v126_v22 }
  0x5d   :  { %v137_v26 = vrot.slane %v136_v24, 2  ;;  %v129_v27 = vrot.slane %v128_v25, 2 }
  0x5f   :  { %v138_v7 = vadd.f32 %v137_v26, %v136_v24  ;;  %v130_v10 = vadd.f32 %v129_v27, %v128_v25 }
  0x61   :  { %v139_v28 = vrot.slane %v138_v7, 1  ;;  %v131_v29 = vrot.slane %v130_v10, 1 }
  0x63   :  { %v140_v11 = vadd.f32 %v139_v28, %v138_v7  ;;  %v132_v12 = vadd.f32 %v131_v29, %v130_v10 }
  0x65   :  { %141 = vst [vmem:[#allocation8] sm:$0x1] %v140_v11  ;;  %133 = vst [vmem:[#allocation7] sm:$0x1] %v132_v12 }
  0x66   :  { %272 = shalt.err (!%p269_p6)
}
  0x67   :  { %s273_s23 = scalar_lea.hbm %s473_s3, 16 }
  0x68   :  { %p274_p7 = scmp.ne.s32.totalorder %s473_s3, %s273_s23  ;;  %p277_p8 = scmp.lt.u32.totalorder %s273_s23, %s473_s3 }
  0x6a   :  { %p279_p9 = pnand %p277_p8, %p274_p7 }
  0x6c   :  { %282 = shalt.err (!%p279_p9)
}
  0x6d   :  { %169 = dma.vmem_to_hbm [thread:$0]  %s167_s14, 16, %s473_s3, [#allocation9]  }
  0x6e   :  { %s283_s30 = scalar_lea.vmem %s418_s16, 16  ;;  %s287_s5 = scalar_lea.vmem %s418_s16, 32 }
  0x6f   :  { %p284_p10 = scmp.ne.s32.totalorder %s418_s16, %s283_s30  ;;  %p288_p11 = scmp.lt.s32.totalorder %s418_s16, %s418_s16 }
  0x70   :  { %p289_p12 = scmp.lt.s32.totalorder %s287_s5, %s283_s30 }
  0x72   :  { %p290_p13 = por %p289_p12, %p288_p11 }
  0x74   :  { %p291_p0 = pnand %p290_p13, %p284_p10 }
  0x76   :  { %294 = shalt.err (!%p291_p0)
}
  0x77   :  { %s295_s8 = scalar_lea.hbm %s472_s2, 16 }
  0x78   :  { %p296_p1 = scmp.ne.s32.totalorder %s472_s2, %s295_s8  ;;  %p299_p2 = scmp.lt.u32.totalorder %s295_s8, %s472_s2 }
  0x7a   :  { %p301_p3 = pnand %p299_p2, %p296_p1 }
  0x7c   :  { %304 = shalt.err (!%p301_p3)
}
  0x7d   :  { %159 = dma.vmem_to_hbm [thread:$0]  %s418_s16, 16, %s472_s2, [#allocation4]  }
  0x7e   :  { %s305_s13 = scalar_lea.vmem %s420_s18, 16  ;;  %s309_s1 = scalar_lea.vmem %s420_s18, 32 }
  0x7f   :  { %p306_p4 = scmp.ne.s32.totalorder %s420_s18, %s305_s13  ;;  %p310_p5 = scmp.lt.s32.totalorder %s420_s18, %s420_s18 }
  0x80   :  { %p311_p6 = scmp.lt.s32.totalorder %s309_s1, %s305_s13 }
  0x82   :  { %p312_p7 = por %p311_p6, %p310_p5 }
  0x84   :  { %p313_p8 = pnand %p312_p7, %p306_p4 }
  0x86   :  { %316 = shalt.err (!%p313_p8)
}
  0x87   :  { %s317_s17 = scalar_lea.hbm %s474_s4, 16 }
  0x88   :  { %p318_p9 = scmp.ne.s32.totalorder %s474_s4, %s317_s17  ;;  %p321_p10 = scmp.lt.u32.totalorder %s317_s17, %s474_s4 }
  0x8a   :  { %p323_p11 = pnand %p321_p10, %p318_p9 }
  0x8c   :  { %326 = shalt.err (!%p323_p11)
}
  0x8d   :  { %179 = dma.vmem_to_hbm [thread:$0]  %s420_s18, 16, %s474_s4, [#allocation9]  }
  0x8e   :  { %331 = dma.done.wait [#allocation4], 16  }
  0x8f   :  { %332 = vsyncadd [#allocation4], 4294967280 }
  0x90   :  { %333 = dma.done.wait [#allocation9], 32  }
  0x91   :  { %334 = vsyncadd [#allocation9], 4294967264 }
  0x92   :  { %189 = vsyncpa [#allocation3], 1 }
  0x93   :  { %190 = vsyncpa [#allocation6], 1 }
  0x94   :  { %191 = vsyncpa [#allocation4], 1 }
  0x95   :  { %192 = vsyncpa [#allocation9], 1 }

</bundles_post_ra>
